<compile_context>
chip_gen: v6e
topology: v6e:2x2x1
jax: 0.10.0
libtpu: 0.0.40
codegen_flags: <defaults>
</compile_context>

<pallas_src>
import functools

import jax
import jax.numpy as jnp
from jax import lax
from jax.experimental import pallas as pl
from jax.experimental.pallas import tpu as pltpu

_EPS = 1e-12  # matches torch.nn.functional.normalize default eps


def _round_up(x, m):
    return ((x + m - 1) // m) * m


def _pick_block_rows(n, block_rows):
    tn = 128 if block_rows is None else int(block_rows)
    tn = min(tn, n)
    return _round_up(max(tn, 1), 8)


def _l2_normalize(x):
    nrm = jnp.sqrt(jnp.sum(x * x, axis=-1, keepdims=True))
    return x / jnp.maximum(nrm, _EPS)


# --------------------------------------------------------------------------
# Kernel 1: unpaired negatives.  query/positive tiled over rows, negatives full.
# --------------------------------------------------------------------------
def _unpaired_kernel(q_ref, p_ref, nk_ref, loss_ref, *, inv_temp):
    qn = _l2_normalize(q_ref[...].astype(jnp.float32))          # (tn, d)
    pn = _l2_normalize(p_ref[...].astype(jnp.float32))          # (tn, d)
    nn = _l2_normalize(nk_ref[...].astype(jnp.float32))         # (m, d)

    pos = jnp.sum(qn * pn, axis=-1, keepdims=True) * inv_temp   # (tn, 1)
    neg = lax.dot_general(                                       # (tn, m) on the MXU
        qn, nn, (((1,), (1,)), ((), ())),
        preferred_element_type=jnp.float32) * inv_temp

    # cross-entropy with label 0 == logsumexp([pos, neg...]) - pos  (stable)
    mx = jnp.maximum(pos, jnp.max(neg, axis=-1, keepdims=True))
    lse = mx + jnp.log(jnp.exp(pos - mx) +
                       jnp.sum(jnp.exp(neg - mx), axis=-1, keepdims=True))
    loss_ref[...] = (lse - pos).astype(loss_ref.dtype)


def _info_nce_unpaired_call(query, positive_key, negative_keys, temperature,
                            block_rows):
    n, d = query.shape
    m = negative_keys.shape[0]
    tn = _pick_block_rows(n, block_rows)
    n_pad = _round_up(n, tn)
    if n_pad != n:
        pad = ((0, n_pad - n), (0, 0))
        query = jnp.pad(query, pad)
        positive_key = jnp.pad(positive_key, pad)

    kernel = functools.partial(_unpaired_kernel, inv_temp=1.0 / float(temperature))
    loss = pl.pallas_call(
        kernel,
        out_shape=jax.ShapeDtypeStruct((n_pad, 1), jnp.float32),
        grid=(n_pad // tn,),
        in_specs=[
            pl.BlockSpec((tn, d), lambda i: (i, 0)),       # query tile
            pl.BlockSpec((tn, d), lambda i: (i, 0)),       # positive tile
            pl.BlockSpec((m, d), lambda i: (0, 0)),        # all negatives (resident)
        ],
        out_specs=pl.BlockSpec((tn, 1), lambda i: (i, 0)),
        compiler_params=pltpu.CompilerParams(
            dimension_semantics=("parallel",)),
    )(query, positive_key, negative_keys)
    return loss[:n, 0]


# --------------------------------------------------------------------------
# Kernel 2: no explicit negatives (labels = arange, keys of other samples are
# the negatives).  query tiled over rows, full (padded) key matrix resident.
# --------------------------------------------------------------------------
def _self_kernel(q_ref, p_ref, loss_ref, *, inv_temp, tn, n_valid):
    i = pl.program_id(0)
    qn = _l2_normalize(q_ref[...].astype(jnp.float32))           # (tn, d)
    pn_all = _l2_normalize(p_ref[...].astype(jnp.float32))       # (n_pad, d)

    logits = lax.dot_general(                                    # (tn, n_pad)
        qn, pn_all, (((1,), (1,)), ((), ())),
        preferred_element_type=jnp.float32) * inv_temp

    # mask out padded key columns so they don't contribute to the denominator
    col = lax.broadcasted_iota(jnp.int32, logits.shape, 1)
    logits = jnp.where(col < n_valid, logits, -jnp.inf)

    # positive logit is the diagonal entry: <q[i], p[i]> for this row tile
    row0 = pl.multiple_of(i * tn, tn)
    pn_diag = _l2_normalize(p_ref[pl.ds(row0, tn), :].astype(jnp.float32))
    pos = jnp.sum(qn * pn_diag, axis=-1, keepdims=True) * inv_temp

    mx = jnp.max(logits, axis=-1, keepdims=True)
    lse = mx + jnp.log(jnp.sum(jnp.exp(logits - mx), axis=-1, keepdims=True))
    loss_ref[...] = (lse - pos).astype(loss_ref.dtype)


def _info_nce_self_call(query, positive_key, temperature, block_rows):
    n, d = query.shape
    tn = _pick_block_rows(n, block_rows)
    n_pad = _round_up(n, tn)
    if n_pad != n:
        pad = ((0, n_pad - n), (0, 0))
        query = jnp.pad(query, pad)
        positive_key = jnp.pad(positive_key, pad)

    kernel = functools.partial(_self_kernel, inv_temp=1.0 / float(temperature),
                               tn=tn, n_valid=n)
    loss = pl.pallas_call(
        kernel,
        out_shape=jax.ShapeDtypeStruct((n_pad, 1), jnp.float32),
        grid=(n_pad // tn,),
        in_specs=[
            pl.BlockSpec((tn, d), lambda i: (i, 0)),         # query tile
            pl.BlockSpec((n_pad, d), lambda i: (0, 0)),      # all (padded) keys
        ],
        out_specs=pl.BlockSpec((tn, 1), lambda i: (i, 0)),
        compiler_params=pltpu.CompilerParams(
            dimension_semantics=("parallel",)),
    )(query, positive_key)
    return loss[:n, 0]


# --------------------------------------------------------------------------
# Public API mirroring the PyTorch module
# --------------------------------------------------------------------------
def info_nce(query, positive_key, negative_keys=None, temperature=0.1,
             reduction='mean', negative_mode='unpaired', block_rows=None):
    query = jnp.asarray(query)
    positive_key = jnp.asarray(positive_key)
    if query.ndim != 2:
        raise ValueError('<query> must have 2 dimensions.')
    if positive_key.ndim != 2:
        raise ValueError('<positive_key> must have 2 dimensions.')
    if query.shape[0] != positive_key.shape[0]:
        raise ValueError('<query> and <positive_key> must have the same number of samples.')
    if query.shape[-1] != positive_key.shape[-1]:
        raise ValueError('Vectors of <query> and <positive_key> should have the same number of components.')

    if negative_keys is not None:
        negative_keys = jnp.asarray(negative_keys)
        if negative_mode == 'unpaired':
            if negative_keys.ndim != 2:
                raise ValueError("<negative_keys> must have 2 dimensions if <negative_mode> == 'unpaired'.")
            if query.shape[-1] != negative_keys.shape[-1]:
                raise ValueError('Vectors of <query> and <negative_keys> should have the same number of components.')
            per_sample = _info_nce_unpaired_call(query, positive_key, negative_keys,
                                                 temperature, block_rows)
        elif negative_mode == 'paired':
            # TODO(synk): negative_mode='paired' ((N, M, D) per-sample negatives) has no
            # Pallas kernel here yet.
            raise NotImplementedError("negative_mode='paired' is not implemented in this Pallas port.")
        else:
            raise ValueError("negative_mode must be 'paired' or 'unpaired'.")
    else:
        per_sample = _info_nce_self_call(query, positive_key, temperature, block_rows)

    if reduction == 'mean':
        return jnp.mean(per_sample)
    if reduction == 'sum':
        return jnp.sum(per_sample)
    if reduction == 'none':
        return per_sample
    raise ValueError("reduction must be one of ['none', 'sum', 'mean'].")


class InfoNCE:
    def __init__(self, temperature=0.1, reduction='mean', negative_mode='unpaired',
                 latent_all=False):
        self.temperature = temperature
        self.reduction = reduction
        self.negative_mode = negative_mode
        self.latent_all = latent_all

    def __call__(self, query, positive_key, negative_keys=None):
        if not self.latent_all:
            return info_nce(query, positive_key, negative_keys,
                            temperature=self.temperature, reduction=self.reduction,
                            negative_mode=self.negative_mode)
        loss = 0.0
        for i in range(query.shape[0]):
            loss = loss + info_nce(query[i], positive_key[i], negative_keys,
                                   temperature=self.temperature, reduction=self.reduction,
                                   negative_mode=self.negative_mode)
        return loss / query.shape[0]


# --------------------------------------------------------------------------
# Pure-JAX reference for verification
# --------------------------------------------------------------------------
def _reference_info_nce(query, positive_key, negative_keys=None, temperature=0.1,
                        reduction='mean', negative_mode='unpaired'):
    def l2(x):
        n = jnp.sqrt(jnp.sum(x * x, axis=-1, keepdims=True))
        return x / jnp.maximum(n, _EPS)

    q, p = l2(query), l2(positive_key)
    if negative_keys is not None:
        nk = l2(negative_keys)
        pos = jnp.sum(q * p, axis=-1, keepdims=True)
        if negative_mode == 'unpaired':
            neg = jnp.matmul(q, nk.T, precision=lax.Precision.HIGHEST)
        else:
            neg = jnp.einsum('nd,nmd->nm', q, nk, precision=lax.Precision.HIGHEST)
        logits = jnp.concatenate([pos, neg], axis=1) / temperature
        labels = jnp.zeros((logits.shape[0],), dtype=jnp.int32)
    else:
        logits = jnp.matmul(q, p.T, precision=lax.Precision.HIGHEST) / temperature
        labels = jnp.arange(q.shape[0])
    lse = jax.scipy.special.logsumexp(logits, axis=-1)
    ll = jnp.take_along_axis(logits, labels[:, None], axis=-1)[:, 0]
    loss = lse - ll
    if reduction == 'mean':
        return jnp.mean(loss)
    if reduction == 'sum':
        return jnp.sum(loss)
    return loss


if __name__ == "__main__":
    key = jax.random.PRNGKey(0)
    batch, num_neg, dim = 32, 48, 128     # shapes from the InfoNCE docstring example
    kq, kp, kn = jax.random.split(key, 3)
    q = jax.random.normal(kq, (batch, dim), dtype=jnp.float32)
    p = jax.random.normal(kp, (batch, dim), dtype=jnp.float32)
    negs = jax.random.normal(kn, (num_neg, dim), dtype=jnp.float32)

    # 1) default module path: unpaired negatives, mean reduction
    loss_fn = InfoNCE(temperature=0.1, reduction='mean', negative_mode='unpaired')
    out = jax.block_until_ready(loss_fn(q, p, negs))
    ref = _reference_info_nce(q, p, negs, 0.1, 'mean', 'unpaired')
    assert jnp.allclose(out, ref, rtol=1e-4, atol=1e-4), (out, ref)

    # 2) tiled path (multiple grid steps) + reduction='none'
    out_none = jax.block_until_ready(
        info_nce(q, p, negs, temperature=0.1, reduction='none', block_rows=16))
    ref_none = _reference_info_nce(q, p, negs, 0.1, 'none', 'unpaired')
    assert out_none.shape == (batch,)
    assert jnp.allclose(out_none, ref_none, rtol=1e-4, atol=1e-4)

    # 3) negative_keys=None path (in-batch negatives, labels = arange)
    out_self = jax.block_until_ready(
        info_nce(q, p, None, temperature=0.1, reduction='mean', block_rows=16))
    ref_self = _reference_info_nce(q, p, None, 0.1, 'mean')
    assert jnp.allclose(out_self, ref_self, rtol=1e-4, atol=1e-4), (out_self, ref_self)

    print("KERNEL_OK")
</pallas_src>

<mosaic_0001>
module attributes {stable_mosaic.version = 11 : i64} {
  func.func @_unpaired_kernel(%arg0: i32, %arg1: memref<32x128xf32, #tpu.memory_space<vmem>>, %arg2: memref<32x128xf32, #tpu.memory_space<vmem>>, %arg3: memref<48x128xf32, #tpu.memory_space<vmem>>, %arg4: memref<32x1xf32, #tpu.memory_space<vmem>>) attributes {dimension_semantics = [#tpu.dimension_semantics<parallel>], iteration_bounds = array<i64: 1>, scalar_prefetch = 0 : i64, scratch_operands = 0 : i64, tpu.core_type = #tpu.core_type<tc>, window_params = [{transform_indices = @transform_0, window_bounds = array<i64: 32, 128>}, {transform_indices = @transform_1, window_bounds = array<i64: 32, 128>}, {pipeline_mode = #tpu.pipeline_mode<synchronous>, transform_indices = @transform_2, window_bounds = array<i64: 48, 128>}, {transform_indices = @transform_3, window_bounds = array<i64: 32, 1>}]} {
    %c0 = arith.constant 0 : index
    %c0_0 = arith.constant 0 : index
    %0 = vector.load %arg1[%c0, %c0_0] : memref<32x128xf32, #tpu.memory_space<vmem>>, vector<32x128xf32>
    %1 = arith.mulf %0, %0 : vector<32x128xf32>
    %cst = arith.constant dense<0.000000e+00> : vector<32xf32>
    %2 = vector.multi_reduction <add>, %1, %cst [1] : vector<32x128xf32> to vector<32xf32>
    %3 = vector.shape_cast %2 : vector<32xf32> to vector<32x1xf32>
    %4 = math.sqrt %3 : vector<32x1xf32>
    %cst_1 = arith.constant 9.99999996E-13 : f32
    %5 = vector.broadcast %cst_1 : f32 to vector<32x1xf32>
    %6 = arith.maximumf %4, %5 : vector<32x1xf32>
    %7 = vector.broadcast %6 : vector<32x1xf32> to vector<32x128xf32>
    %8 = arith.divf %0, %7 : vector<32x128xf32>
    %c0_2 = arith.constant 0 : index
    %c0_3 = arith.constant 0 : index
    %9 = vector.load %arg2[%c0_2, %c0_3] : memref<32x128xf32, #tpu.memory_space<vmem>>, vector<32x128xf32>
    %10 = arith.mulf %9, %9 : vector<32x128xf32>
    %cst_4 = arith.constant dense<0.000000e+00> : vector<32xf32>
    %11 = vector.multi_reduction <add>, %10, %cst_4 [1] : vector<32x128xf32> to vector<32xf32>
    %12 = vector.shape_cast %11 : vector<32xf32> to vector<32x1xf32>
    %13 = math.sqrt %12 : vector<32x1xf32>
    %cst_5 = arith.constant 9.99999996E-13 : f32
    %14 = vector.broadcast %cst_5 : f32 to vector<32x1xf32>
    %15 = arith.maximumf %13, %14 : vector<32x1xf32>
    %16 = vector.broadcast %15 : vector<32x1xf32> to vector<32x128xf32>
    %17 = arith.divf %9, %16 : vector<32x128xf32>
    %c0_6 = arith.constant 0 : index
    %c0_7 = arith.constant 0 : index
    %18 = vector.load %arg3[%c0_6, %c0_7] : memref<48x128xf32, #tpu.memory_space<vmem>>, vector<48x128xf32>
    %19 = arith.mulf %18, %18 : vector<48x128xf32>
    %cst_8 = arith.constant dense<0.000000e+00> : vector<48xf32>
    %20 = vector.multi_reduction <add>, %19, %cst_8 [1] : vector<48x128xf32> to vector<48xf32>
    %21 = vector.shape_cast %20 : vector<48xf32> to vector<48x1xf32>
    %22 = math.sqrt %21 : vector<48x1xf32>
    %cst_9 = arith.constant 9.99999996E-13 : f32
    %23 = vector.broadcast %cst_9 : f32 to vector<48x1xf32>
    %24 = arith.maximumf %22, %23 : vector<48x1xf32>
    %25 = vector.broadcast %24 : vector<48x1xf32> to vector<48x128xf32>
    %26 = arith.divf %18, %25 : vector<48x128xf32>
    %27 = arith.mulf %8, %17 : vector<32x128xf32>
    %cst_10 = arith.constant dense<0.000000e+00> : vector<32xf32>
    %28 = vector.multi_reduction <add>, %27, %cst_10 [1] : vector<32x128xf32> to vector<32xf32>
    %29 = vector.shape_cast %28 : vector<32xf32> to vector<32x1xf32>
    %cst_11 = arith.constant 1.000000e+01 : f32
    %30 = vector.broadcast %cst_11 : f32 to vector<32x1xf32>
    %31 = arith.mulf %29, %30 : vector<32x1xf32>
    %cst_12 = arith.constant dense<0.000000e+00> : vector<32x48xf32>
    %32 = tpu.matmul %8, %26, %cst_12 {dimension_numbers = #tpu.dot_dimension_numbers<[1], [1], [0], [0], [0, 0, 1, 0], [], []>} : vector<32x128xf32>, vector<48x128xf32>, vector<32x48xf32> -> vector<32x48xf32>
    %cst_13 = arith.constant 1.000000e+01 : f32
    %33 = vector.broadcast %cst_13 : f32 to vector<32x48xf32>
    %34 = arith.mulf %32, %33 : vector<32x48xf32>
    %cst_14 = arith.constant dense<0xFF800000> : vector<32xf32>
    %35 = vector.multi_reduction <maximumf>, %34, %cst_14 [1] : vector<32x48xf32> to vector<32xf32>
    %36 = vector.shape_cast %35 : vector<32xf32> to vector<32x1xf32>
    %37 = arith.maximumf %31, %36 : vector<32x1xf32>
    %38 = arith.subf %31, %37 : vector<32x1xf32>
    %39 = math.exp %38 : vector<32x1xf32>
    %40 = vector.broadcast %37 : vector<32x1xf32> to vector<32x48xf32>
    %41 = arith.subf %34, %40 : vector<32x48xf32>
    %42 = math.exp %41 : vector<32x48xf32>
    %cst_15 = arith.constant dense<0.000000e+00> : vector<32xf32>
    %43 = vector.multi_reduction <add>, %42, %cst_15 [1] : vector<32x48xf32> to vector<32xf32>
    %44 = vector.shape_cast %43 : vector<32xf32> to vector<32x1xf32>
    %45 = arith.addf %39, %44 : vector<32x1xf32>
    %46 = math.log %45 : vector<32x1xf32>
    %47 = arith.addf %37, %46 : vector<32x1xf32>
    %48 = arith.subf %47, %31 : vector<32x1xf32>
    %c0_16 = arith.constant 0 : index
    %c0_17 = arith.constant 0 : index
    %49 = vector.load %arg4[%c0_16, %c0_17] : memref<32x1xf32, #tpu.memory_space<vmem>>, vector<32x1xf32>
    tpu.vector_store %arg4[%c0_16, %c0_17], %48 {strides = array<i32>} : memref<32x1xf32, #tpu.memory_space<vmem>>, vector<32x1xf32>,
    return
  }
  func.func @transform_0(%arg0: i32) -> (i32, i32) {
    %c0_i32 = arith.constant 0 : i32
    %c0_i32_0 = arith.constant 0 : i32
    return %arg0, %c0_i32 : i32, i32
  }
  func.func @transform_1(%arg0: i32) -> (i32, i32) {
    %c0_i32 = arith.constant 0 : i32
    %c0_i32_0 = arith.constant 0 : i32
    return %arg0, %c0_i32 : i32, i32
  }
  func.func @transform_2(%arg0: i32) -> (i32, i32) {
    %c0_i32 = arith.constant 0 : i32
    %c0_i32_0 = arith.constant 0 : i32
    %c0_i32_1 = arith.constant 0 : i32
    return %c0_i32, %c0_i32_0 : i32, i32
  }
  func.func @transform_3(%arg0: i32) -> (i32, i32) {
    %c0_i32 = arith.constant 0 : i32
    %c0_i32_0 = arith.constant 0 : i32
    return %arg0, %c0_i32 : i32, i32
  }
}

</mosaic_0001>

<bundles_post_ra>
// kernel: tpu_custom_call.1
= control target key start
LH: loop header
LB: loop body
LE: loop exit
PB: predicated region body
PF: predicated region fallthrough
CT: control target
= control target key end

     0   :  { %8 = vsyncpa [#allocation3], 0  ;;  %s895_s0 = inlined_call_operand.hbm [shape: f32[32,128], index: 0, kind: input, shape index: {}]   ;;  %s896_s1 = inlined_call_operand.hbm [shape: f32[32,128], index: 1, kind: input, shape index: {}]   ;;  %s897_s2 = inlined_call_operand.hbm [shape: f32[48,128], index: 2, kind: input, shape index: {}]   ;;  %s898_s3 = inlined_call_operand.vmem [shape: f32[32,1], index: 3, kind: output, shape index: {}]  }
   0x1   :  { %9 = vsyncpa [#allocation5], 0  ;;  %s629_s12 = smov [#allocation4]   ;;  %s630_s14 = smov [#allocation2]  }
   0x2   :  { %s27_s13 = sshll.u32 %s629_s12, 4  ;;  %s15_s15 = sshll.u32 %s630_s14, 4  ;;  %s28_s13 = int_to_ptr.vmem [resolvable:$true] %s27_s13  ;;  %s16_s15 = int_to_ptr.vmem [resolvable:$true] %s15_s15 }
   0x3   :  { %s573_s16 = scalar_lea.vmem %s28_s13, 512  ;;  %p578_p1 = scmp.lt.s32.totalorder %s28_s13, %s28_s13 }
   0x4   :  { %p574_p0 = scmp.ne.s32.totalorder %s28_s13, %s573_s16  ;;  %p579_p2 = scmp.lt.s32.totalorder %s573_s16, %s573_s16 }
   0x6   :  { %p580_p3 = por %p579_p2, %p578_p1 }
   0x8   :  { %p581_p4 = pnand %p580_p3, %p574_p0 }
   0xa   :  { %584 = shalt.err (!%p581_p4)
}
   0xb   :  { %s631_s17 = smov 128   ;;  %s632_s18 = smov 8  }
   0xc   :  { %33 = dma.hbm_to_vmem [thread:$0]  %s896_s1, 512, %s28_s13, [#allocation5], %s631_s17, %s631_s17, %s632_s18  }
   0xd   :  { %s593_s21 = scalar_lea.vmem %s16_s15, 512  ;;  %p598_p6 = scmp.lt.s32.totalorder %s16_s15, %s16_s15 }
   0xe   :  { %p594_p5 = scmp.ne.s32.totalorder %s16_s15, %s593_s21  ;;  %p599_p7 = scmp.lt.s32.totalorder %s593_s21, %s593_s21 }
  0x10   :  { %p600_p8 = por %p599_p7, %p598_p6 }
  0x12   :  { %p601_p9 = pnand %p600_p8, %p594_p5 }
  0x14   :  { %604 = shalt.err (!%p601_p9)
}
  0x15   :  { %21 = dma.hbm_to_vmem [thread:$0]  %s895_s0, 512, %s16_s15, [#allocation3], %s631_s17, %s631_s17, %s632_s18  }
  0x16   :  { %s633_s24 = smov [#allocation6]  }
  0x17   :  { %s39_s25 = sshll.u32 %s633_s24, 4  ;;  %s40_s25 = int_to_ptr.vmem [resolvable:$true] %s39_s25 }
  0x18   :  { %s613_s26 = scalar_lea.vmem %s40_s25, 768  ;;  %p618_p11 = scmp.lt.s32.totalorder %s40_s25, %s40_s25 }
  0x19   :  { %p614_p10 = scmp.ne.s32.totalorder %s40_s25, %s613_s26  ;;  %p619_p12 = scmp.lt.s32.totalorder %s613_s26, %s613_s26 }
  0x1b   :  { %p620_p13 = por %p619_p12, %p618_p11 }
  0x1d   :  { %p621_p0 = pnand %p620_p13, %p614_p10 }
  0x1f   :  { %624 = shalt.err (!%p621_p0)
}
  0x20   :  { %45 = dma.hbm_to_vmem [thread:$0]  %s897_s2, 768, %s40_s25, [#allocation5], %s631_s17, %s631_s17, %s632_s18  }
  0x21   :  { %625 = dma.done.wait [#allocation3], 512  }
  0x22   :  { %626 = vsyncadd [#allocation3], 4294966784 }
  0x23   :  { %627 = dma.done.wait [#allocation5], 1280  }
  0x24   :  { %628 = vsyncadd [#allocation5], 4294966016  ;;  %v663_v0 = vld [vmem:[#allocation6 + $0x28] sm:$0xff]  ;;  %v665_v1 = vld [vmem:[#allocation6 + $0x18] sm:$0xff] }
  0x25   :  { %v667_v2 = vld [vmem:[#allocation6 + $0x20] sm:$0xff]  ;;  %v178_v3 = vmul.f32 %v663_v0, %v663_v0  ;;  %v176_v4 = vmul.f32 %v665_v1, %v665_v1  ;;  %v673_v5 = vld [vmem:[#allocation6 + $0x10] sm:$0xff]  ;;  %v679_v8 = vld [vmem:[#allocation6 + $0x8] sm:$0xff] }
  0x26   :  { %v177_v6 = vmul.f32 %v667_v2, %v667_v2  ;;  %v175_v7 = vmul.f32 %v673_v5, %v673_v5  ;;  %v681_v9 = vld [vmem:[#allocation6] sm:$0xff]  ;;  %v174_v10 = vmul.f32 %v679_v8, %v679_v8  ;;  %v687_v12 = vld [vmem:[#allocation2 + $0x10] sm:$0xff]  ;;  %v695_v16 = vld [vmem:[#allocation2 + $0x18] sm:$0xff] }
  0x27   :  { %189 = vadd.xlane.f32.xlu0 %v178_v3  ;;  %185 = vadd.xlane.f32.xlu1 %v176_v4  ;;  %v173_v11 = vmul.f32 %v681_v9, %v681_v9  ;;  %v689_v13 = vld [vmem:[#allocation2] sm:$0xff]  ;;  %v61_v14 = vmul.f32 %v687_v12, %v687_v12  ;;  %v697_v17 = vld [vmem:[#allocation2 + $0x8] sm:$0xff]  ;;  %v62_v18 = vmul.f32 %v695_v16, %v695_v16  ;;  %v711_v24 = vld [vmem:[#allocation4 + $0x18] sm:$0xff] }
  0x28   :  { %v59_v15 = vmul.f32 %v689_v13, %v689_v13  ;;  %v60_v19 = vmul.f32 %v697_v17, %v697_v17  ;;  %v703_v20 = vld [vmem:[#allocation4 + $0x8] sm:$0xff]  ;;  %v705_v21 = vld [vmem:[#allocation4] sm:$0xff]  ;;  %v713_v25 = vld [vmem:[#allocation4 + $0x10] sm:$0xff]  ;;  %v118_v26 = vmul.f32 %v711_v24, %v711_v24 }
  0x29   :  { %v116_v22 = vmul.f32 %v703_v20, %v703_v20  ;;  %v115_v23 = vmul.f32 %v705_v21, %v705_v21  ;;  %v117_v27 = vmul.f32 %v713_v25, %v713_v25 }
  0x2b   :  { %187 = vadd.xlane.f32.xlu0 %v177_v6  ;;  %183 = vadd.xlane.f32.xlu1 %v175_v7 }
  0x2f   :  { %181 = vadd.xlane.f32.xlu0 %v174_v10  ;;  %179 = vadd.xlane.f32.xlu1 %v173_v11 }
  0x33   :  { %67 = vadd.xlane.f32.xlu1 %v61_v14  ;;  %63 = vadd.xlane.f32.xlu0 %v59_v15 }
  0x37   :  { %69 = vadd.xlane.f32.xlu1 %v62_v18  ;;  %65 = vadd.xlane.f32.xlu0 %v60_v19 }
  0x3b   :  { %121 = vadd.xlane.f32.xlu1 %v116_v22  ;;  %119 = vadd.xlane.f32.xlu0 %v115_v23 }
  0x3f   :  { %125 = vadd.xlane.f32.xlu1 %v118_v26  ;;  %123 = vadd.xlane.f32.xlu0 %v117_v27 }
  0xb0   :  { %v190_v28 = vpop.xlane.xlu0 %189  ;;  %v186_v29 = vpop.xlane.xlu1 %185 }
  0xb1   :  { %485 = vrsqrt.f32 %v190_v28  ;;  %vm228_vm0 = vcmp.eq.f32.partialorder %v190_v28, inf  ;;  %vm230_vm1 = vcmp.eq.f32.partialorder %v190_v28, 0.0  ;;  %v231_v39 = vand.u32 2147483648, %v190_v28 }
  0xb2   :  { %487 = vrsqrt.f32 %v186_v29  ;;  %vm214_vm2 = vcmp.eq.f32.partialorder %v186_v29, inf  ;;  %vm216_vm3 = vcmp.eq.f32.partialorder %v186_v29, 0.0  ;;  %v217_v44 = vand.u32 2147483648, %v186_v29 }
  0xb4   :  { %v188_v30 = vpop.xlane.xlu0 %187  ;;  %v184_v31 = vpop.xlane.xlu1 %183 }
  0xb5   :  { %489 = vrsqrt.f32 %v188_v30  ;;  %vm221_vm4 = vcmp.eq.f32.partialorder %v188_v30, inf  ;;  %vm223_vm5 = vcmp.eq.f32.partialorder %v188_v30, 0.0  ;;  %v224_v52 = vand.u32 2147483648, %v188_v30 }
  0xb6   :  { %491 = vrsqrt.f32 %v184_v31  ;;  %vm207_vm6 = vcmp.eq.f32.partialorder %v184_v31, inf  ;;  %vm209_vm7 = vcmp.eq.f32.partialorder %v184_v31, 0.0  ;;  %v210_v57 = vand.u32 2147483648, %v184_v31 }
  0xb8   :  { %v719_v32 = vpop.xlane.xlu0 %181  ;;  %v721_v33 = vpop.xlane.xlu1 %179 }
  0xb9   :  { %493 = vrsqrt.f32 %v719_v32  ;;  %vm200_vm8 = vcmp.eq.f32.partialorder %v719_v32, inf  ;;  %vm202_vm9 = vcmp.eq.f32.partialorder %v719_v32, 0.0  ;;  %v203_v6 = vand.u32 2147483648, %v719_v32 }
  0xba   :  { %495 = vrsqrt.f32 %v721_v33  ;;  %vm193_vm10 = vcmp.eq.f32.partialorder %v721_v33, inf  ;;  %vm195_vm11 = vcmp.eq.f32.partialorder %v721_v33, 0.0  ;;  %v196_v19 = vand.u32 2147483648, %v721_v33 }
  0xbc   :  { %v725_v34 = vpop.xlane.xlu1 %67  ;;  %v727_v35 = vpop.xlane.xlu0 %63 }
  0xbd   :  { %497 = vrsqrt.f32 %v725_v34  ;;  %vm87_vm12 = vcmp.eq.f32.partialorder %v725_v34, inf  ;;  %vm89_vm13 = vcmp.eq.f32.partialorder %v725_v34, 0.0  ;;  %v90_v27 = vand.u32 2147483648, %v725_v34 }
  0xbe   :  { %v486_v36 = vpop.eup %485  ;;  %499 = vrsqrt.f32 %v727_v35  ;;  %vm73_vm14 = vcmp.eq.f32.partialorder %v727_v35, inf  ;;  %vm75_vm15 = vcmp.eq.f32.partialorder %v727_v35, 0.0 }
  0xbf   :  { %v488_v37 = vpop.eup %487  ;;  %v227_v38 = vmul.f32 %v486_v36, %v190_v28 }
  0xc0   :  { %v213_v40 = vmul.f32 %v488_v37, %v186_v29  ;;  %v731_v41 = vpop.xlane.xlu1 %69  ;;  %v733_v42 = vpop.xlane.xlu0 %65 }
  0xc1   :  { %v229_v43 = vsel %vm228_vm0, %v190_v28, %v227_v38  ;;  %501 = vrsqrt.f32 %v731_v41  ;;  %vm94_vm0 = vcmp.eq.f32.partialorder %v731_v41, inf }
  0xc2   :  { %v490_v45 = vpop.eup %489  ;;  %v232_v46 = vsel %vm230_vm1, %v231_v39, %v229_v43  ;;  %v215_v47 = vsel %vm214_vm2, %v186_v29, %v213_v40  ;;  %503 = vrsqrt.f32 %v733_v42  ;;  %v97_v40 = vand.u32 2147483648, %v731_v41 }
  0xc3   :  { %v492_v48 = vpop.eup %491  ;;  %v238_v49 = vmax.f32 %v232_v46, 1e-12  ;;  %v218_v50 = vsel %vm216_vm3, %v217_v44, %v215_v47  ;;  %v220_v51 = vmul.f32 %v490_v45, %v188_v30  ;;  %vm80_vm1 = vcmp.eq.f32.partialorder %v733_v42, inf }
  0xc4   :  { %v236_v53 = vmax.f32 %v218_v50, 1e-12  ;;  %v206_v54 = vmul.f32 %v492_v48, %v184_v31  ;;  %v737_v55 = vpop.xlane.xlu1 %121  ;;  %v741_v58 = vpop.xlane.xlu0 %119  ;;  %vm96_vm2 = vcmp.eq.f32.partialorder %v731_v41, 0.0  ;;  %vm82_vm3 = vcmp.eq.f32.partialorder %v733_v42, 0.0 }
  0xc5   :  { %505 = vrcp.f32 %v238_v49  ;;  %v222_v56 = vsel %vm221_vm4, %v188_v30, %v220_v51  ;;  %vm136_vm4 = vcmp.eq.f32.partialorder %v737_v55, inf }
  0xc6   :  { %v494_v59 = vpop.eup %493  ;;  %507 = vrcp.f32 %v236_v53  ;;  %v225_v60 = vsel %vm223_vm5, %v224_v52, %v222_v56  ;;  %v208_v61 = vsel %vm207_vm6, %v184_v31, %v206_v54  ;;  %vm138_vm5 = vcmp.eq.f32.partialorder %v737_v55, 0.0 }
  0xc7   :  { %v496_v62 = vpop.eup %495  ;;  %v237_v63 = vmax.f32 %v225_v60, 1e-12  ;;  %v211_v3 = vsel %vm209_vm7, %v210_v57, %v208_v61  ;;  %v199_v4 = vmul.f32 %v494_v59, %v719_v32  ;;  %509 = vrsqrt.f32 %v737_v55 }
  0xc8   :  { %v192_v7 = vmul.f32 %v496_v62, %v721_v33  ;;  %511 = vrsqrt.f32 %v741_v58  ;;  %v751_v10 = vpop.xlane.xlu1 %125  ;;  %v235_v11 = vmax.f32 %v211_v3, 1e-12  ;;  %v769_v30 = vpop.xlane.xlu0 %123  ;;  %v139_v57 = vand.u32 2147483648, %v737_v55 }
  0xc9   :  { %513 = vrcp.f32 %v237_v63  ;;  %v201_v14 = vsel %vm200_vm8, %v719_v32, %v199_v4  ;;  %v76_v32 = vand.u32 2147483648, %v727_v35  ;;  %vm129_vm6 = vcmp.eq.f32.partialorder %v741_v58, inf }
  0xca   :  { %v498_v15 = vpop.eup %497  ;;  %v204_v18 = vsel %vm202_vm9, %v203_v6, %v201_v14  ;;  %v194_v23 = vsel %vm193_vm10, %v721_v33, %v192_v7  ;;  %515 = vrsqrt.f32 %v751_v10  ;;  %vm131_vm7 = vcmp.eq.f32.partialorder %v741_v58, 0.0 }
  0xcb   :  { %v500_v22 = vpop.eup %499  ;;  %v86_v26 = vmul.f32 %v498_v15, %v725_v34  ;;  %v234_v28 = vmax.f32 %v204_v18, 1e-12  ;;  %517 = vrcp.f32 %v235_v11  ;;  %v197_v37 = vsel %vm195_vm11, %v196_v19, %v194_v23 }
  0xcc   :  { %v72_v29 = vmul.f32 %v500_v22, %v727_v35  ;;  %519 = vrsqrt.f32 %v769_v30  ;;  %v233_v33 = vmax.f32 %v197_v37, 1e-12  ;;  %vm150_vm8 = vcmp.eq.f32.partialorder %v751_v10, inf }
  0xcd   :  { %v88_v31 = vsel %vm87_vm12, %v725_v34, %v86_v26  ;;  %521 = vrcp.f32 %v234_v28  ;;  %vm152_vm9 = vcmp.eq.f32.partialorder %v751_v10, 0.0  ;;  %v153_v11 = vand.u32 2147483648, %v751_v10 }
  0xce   :  { %v502_v36 = vpop.eup %501  ;;  %v91_v38 = vsel %vm89_vm13, %v90_v27, %v88_v31  ;;  %v74_v39 = vsel %vm73_vm14, %v727_v35, %v72_v29  ;;  %v83_v35 = vand.u32 2147483648, %v733_v42  ;;  %vm143_vm10 = vcmp.eq.f32.partialorder %v769_v30, inf }
  0xcf   :  { %v504_v43 = vpop.eup %503  ;;  %v101_v44 = vmax.f32 %v91_v38, 1e-12  ;;  %v77_v45 = vsel %vm75_vm15, %v76_v32, %v74_v39  ;;  %v93_v46 = vmul.f32 %v502_v36, %v731_v41  ;;  %v146_v23 = vand.u32 2147483648, %v769_v30 }
  0xd0   :  { %v99_v47 = vmax.f32 %v77_v45, 1e-12  ;;  %v79_v48 = vmul.f32 %v504_v43, %v733_v42  ;;  %vm145_vm11 = vcmp.eq.f32.partialorder %v769_v30, 0.0  ;;  %vm356_vm12 = vcmask 392192  }
  0xd1   :  { %523 = vrcp.f32 %v101_v44  ;;  %v95_v34 = vsel %vm94_vm0, %v731_v41, %v93_v46  ;;  %vm429_vm13 = vcmask 7168  }
  0xd2   :  { %v506_v49 = vpop.eup %505  ;;  %525 = vrcp.f32 %v99_v47  ;;  %v81_v50 = vsel %vm80_vm1, %v733_v42, %v79_v48  ;;  %v98_v52 = vsel %vm96_vm2, %v97_v40, %v95_v34  ;;  %v132_v42 = vand.u32 2147483648, %v741_v58 }
  0xd3   :  { %v508_v51 = vpop.eup %507  ;;  %v84_v53 = vsel %vm82_vm3, %v83_v35, %v81_v50  ;;  %v250_v54 = vmul.f32 %v506_v49, %v663_v0  ;;  %527 = vrcp.f32 %v233_v33  ;;  %v102_v0 = vmax.f32 %v98_v52, 1e-12 }
  0xd4   :  { %v510_v56 = vpop.eup %509  ;;  %v100_v41 = vmax.f32 %v84_v53, 1e-12  ;;  %v246_v14 = vmul.f32 %v508_v51, %v665_v1 }
  0xd5   :  { %v512_v59 = vpop.eup %511  ;;  %v135_v60 = vmul.f32 %v510_v56, %v737_v55  ;;  %450 = vmatprep.subr.mxu0 %v250_v54  ;;  %468 = vmatprep.subr.mxu1 %v250_v54 }
  0xd6   :  { %v514_v61 = vpop.eup %513  ;;  %v128_v62 = vmul.f32 %v512_v59, %v741_v58  ;;  %451 = vmatpush3.xpose.msra.mxu0 %v250_v54  ;;  %474 = vmatpush3.xpose.msra.mxu1 %v250_v54  ;;  %529 = vrcp.f32 %v100_v41 }
  0xd7   :  { %v137_v63 = vsel %vm136_vm4, %v737_v55, %v135_v60  ;;  %v248_v3 = vmul.f32 %v514_v61, %v667_v2  ;;  %v516_v4 = vpop.eup %515  ;;  %531 = vrcp.f32 %v102_v0 }
  0xd8   :  { %v140_v6 = vsel %vm138_vm5, %v139_v57, %v137_v63  ;;  %v130_v7 = vsel %vm129_vm6, %v741_v58, %v128_v62  ;;  %v149_v19 = vmul.f32 %v516_v4, %v751_v10  ;;  %v518_v2 = vpop.eup %517 }
  0xd9   :  { %v156_v15 = vmax.f32 %v140_v6, 1e-12  ;;  %v133_v18 = vsel %vm131_vm7, %v132_v42, %v130_v7  ;;  %452 = vmatprep.subr.mxu0 %v248_v3  ;;  %469 = vmatprep.subr.mxu1 %v248_v3  ;;  %v520_v1 = vpop.eup %519  ;;  %v244_v29 = vmul.f32 %v518_v2, %v673_v5 }
  0xda   :  { %v155_v22 = vmax.f32 %v133_v18, 1e-12  ;;  %453 = vmatpush3.xpose.msra.mxu0 %v248_v3  ;;  %475 = vmatpush3.xpose.msra.mxu1 %v248_v3  ;;  %v151_v55 = vsel %vm150_vm8, %v751_v10, %v149_v19  ;;  %v522_v26 = vpop.eup %521  ;;  %v142_v28 = vmul.f32 %v520_v1, %v769_v30 }
  0xdb   :  { %533 = vrcp.f32 %v156_v15  ;;  %454 = vmatprep.subr.mxu0 %v246_v14  ;;  %470 = vmatprep.subr.mxu1 %v246_v14  ;;  %v154_v58 = vsel %vm152_vm9, %v153_v11, %v151_v55  ;;  %v242_v40 = vmul.f32 %v522_v26, %v679_v8 }
  0xdc   :  { %535 = vrcp.f32 %v155_v22  ;;  %v158_v27 = vmax.f32 %v154_v58, 1e-12  ;;  %v144_v10 = vsel %vm143_vm10, %v769_v30, %v142_v28 }
  0xdd   :  { %v147_v37 = vsel %vm145_vm11, %v146_v23, %v144_v10 }
  0xde   :  { %v524_v31 = vpop.eup %523  ;;  %455 = vmatpush3.xpose.msra.mxu0 %v246_v14  ;;  %476 = vmatpush3.xpose.msra.mxu1 %v246_v14  ;;  %537 = vrcp.f32 %v158_v27  ;;  %v157_v39 = vmax.f32 %v147_v37, 1e-12 }
  0xdf   :  { %v526_v32 = vpop.eup %525  ;;  %456 = vmatprep.subr.mxu0 %v244_v29  ;;  %471 = vmatprep.subr.mxu1 %v244_v29  ;;  %v108_v36 = vmul.f32 %v524_v31, %v687_v12 }
  0xe0   :  { %v104_v38 = vmul.f32 %v526_v32, %v689_v13  ;;  %v528_v43 = vpop.eup %527  ;;  %539 = vrcp.f32 %v157_v39 }
  0xe1   :  { %465 = vmatprep.mubr.f32.mxu1 %v108_v36  ;;  %v240_v5 = vmul.f32 %v528_v43, %v681_v9 }
  0xe2   :  { %462 = vmatprep.mubr.f32.mxu0 %v104_v38  ;;  %457 = vmatpush3.xpose.msra.mxu0 %v244_v29 }
  0xe3   :  { %477 = vmatpush3.xpose.msra.mxu1 %v244_v29  ;;  %458 = vmatprep.subr.mxu0 %v242_v40  ;;  %v530_v30 = vpop.eup %529 }
  0xe4   :  { %472 = vmatprep.subr.mxu1 %v242_v40  ;;  %v532_v44 = vpop.eup %531  ;;  %v106_v45 = vmul.f32 %v530_v30, %v697_v17 }
  0xe5   :  { %v110_v9 = vmul.f32 %v532_v44, %v695_v16 }
  0xe6   :  { %459 = vmatpush3.xpose.msra.mxu0 %v242_v40 }
  0xe7   :  { %478 = vmatpush3.xpose.msra.mxu1 %v242_v40  ;;  %460 = vmatprep.subr.mxu0 %v240_v5 }
  0xe8   :  { %v534_v12 = vpop.eup %533  ;;  %473 = vmatprep.subr.mxu1 %v240_v5 }
  0xe9   :  { %v536_v13 = vpop.eup %535  ;;  %v162_v8 = vmul.f32 %v534_v12, %v703_v20 }
  0xea   :  { %461 = vmatpush3.xpose.msra.mxu0 %v240_v5  ;;  %v160_v46 = vmul.f32 %v536_v13, %v705_v21 }
  0xeb   :  { %479 = vmatpush3.xpose.msra.mxu1 %v240_v5  ;;  %v252_v47 = vmul.f32 %v162_v8, %v106_v45  ;;  %v538_v48 = vpop.eup %537 }
  0xec   :  { %v251_v33 = vmul.f32 %v160_v46, %v104_v38  ;;  %v166_v34 = vmul.f32 %v538_v48, %v711_v24 }
  0xed   :  { %257 = vadd.xlane.f32.xlu1 %v252_v47  ;;  %463 = vmatmul.mubr.f32.vlgmr.msra.gmra.mxu0 %v106_v45  ;;  %v540_v49 = vpop.eup %539 }
  0xee   :  { %255 = vadd.xlane.f32.xlu0 %v251_v33  ;;  %466 = vmatmul.mubr.f32.vlgmr.msra.gmra.mxu1 %v110_v9  ;;  %v254_v35 = vmul.f32 %v166_v34, %v110_v9  ;;  %v164_v17 = vmul.f32 %v540_v49, %v713_v25 }
  0xf0   :  { %v253_v20 = vmul.f32 %v164_v17, %v108_v36 }
  0xf1   :  { %261 = vadd.xlane.f32.xlu1 %v254_v35 }
  0xf2   :  { %259 = vadd.xlane.f32.xlu0 %v253_v20 }
 0x176   :  { %v258_v41 = vpop.xlane.xlu1 %257 }
 0x177   :  { %v256_v60 = vpop.xlane.xlu0 %255  ;;  %v839_v0 = vmul.f32 10.0, %v258_v41 }
 0x178   :  { %v841_v63 = vmul.f32 10.0, %v256_v60 }
 0x17a   :  { %v262_v42 = vpop.xlane.xlu1 %261 }
 0x17b   :  { %v260_v61 = vpop.xlane.xlu0 %259  ;;  %v850_v11 = vmul.f32 10.0, %v262_v42 }
 0x17c   :  { %v852_v15 = vmul.f32 10.0, %v260_v61 }
 0x1ad   :  { %v464_v21 = vpop.f32.mrf.mxu0 }
 0x1ae   :  { %v353_v50 = vmul.f32 10.0, %v464_v21  ;;  %v467_v51 = vpop.f32.mrf.mxu1 }
 0x1af   :  { %v333_v52 = vpop.f32.mrf.mxu0  ;;  %v355_v53 = vmul.f32 10.0, %v467_v51 }
 0x1b0   :  { %v352_v16 = vmul.f32 10.0, %v333_v52  ;;  %v343_v54 = vpop.f32.mrf.mxu1  ;;  %v360_v56 = vsel %vm356_vm12, %v353_v50, -inf }
 0x1b1   :  { %361 = vmax.xlane.f32.xlu1 %v360_v56  ;;  %v354_v24 = vmul.f32 10.0, %v343_v54  ;;  %v366_v59 = vsel %vm356_vm12, %v355_v53, -inf }
 0x1b2   :  { %v357_v57 = vsel %vm356_vm12, %v352_v16, -inf }
 0x1b3   :  { %358 = vmax.xlane.f32.xlu0 %v357_v57  ;;  %v363_v25 = vsel %vm356_vm12, %v354_v24, -inf }
 0x1b5   :  { %367 = vmax.xlane.f32.xlu1 %v366_v59 }
 0x1b7   :  { %364 = vmax.xlane.f32.xlu0 %v363_v25 }
 0x23a   :  { %v362_v62 = vpop.xlane.xlu1 %361 }
 0x23b   :  { %v844_v3 = vmax.f32 %v839_v0, %v362_v62 }
 0x23c   :  { %v359_v4 = vpop.xlane.xlu0 %358 }
 0x23d   :  { %v386_v6 = vsub.f32 %v353_v50, %v844_v3  ;;  %v848_v7 = vmax.f32 %v841_v63, %v359_v4  ;;  %v374_v39 = vsub.f32 %v839_v0, %v844_v3 }
 0x23e   :  { %v368_v14 = vpop.xlane.xlu1 %367 }
 0x23f   :  { %v391_v18 = vmul.f32 1.442695, %v386_v6  ;;  %v385_v19 = vsub.f32 %v352_v16, %v848_v7  ;;  %v856_v2 = vmax.f32 %v850_v11, %v368_v14  ;;  %v373_v40 = vsub.f32 %v841_v63, %v848_v7 }
 0x240   :  { %v365_v22 = vpop.xlane.xlu0 %364  ;;  %v379_v43 = vmul.f32 1.442695, %v374_v39 }
 0x241   :  { %v389_v55 = vmul.f32 1.442695, %v385_v19  ;;  %v859_v1 = vmax.f32 %v852_v15, %v365_v22  ;;  %541 = vpow2.f32 %v391_v18  ;;  %v388_v58 = vsub.f32 %v355_v53, %v856_v2 }
 0x242   :  { %v376_v5 = vsub.f32 %v850_v11, %v856_v2  ;;  %v377_v30 = vmul.f32 1.442695, %v373_v40 }
 0x243   :  { %v387_v23 = vsub.f32 %v354_v24, %v859_v1  ;;  %543 = vpow2.f32 %v389_v55  ;;  %v395_v26 = vmul.f32 1.442695, %v388_v58  ;;  %v375_v44 = vsub.f32 %v852_v15, %v859_v1 }
 0x244   :  { %v383_v12 = vmul.f32 1.442695, %v376_v5 }
 0x245   :  { %v393_v27 = vmul.f32 1.442695, %v387_v23  ;;  %545 = vpow2.f32 %v395_v26  ;;  %v381_v13 = vmul.f32 1.442695, %v375_v44 }
 0x247   :  { %547 = vpow2.f32 %v393_v27 }
 0x248   :  { %549 = vpow2.f32 %v379_v43 }
 0x249   :  { %551 = vpow2.f32 %v377_v30 }
 0x24a   :  { %553 = vpow2.f32 %v383_v12 }
 0x24b   :  { %555 = vpow2.f32 %v381_v13 }
 0x24e   :  { %v542_v28 = vpop.eup %541 }
 0x24f   :  { %v400_v29 = vsel %vm356_vm12, %v542_v28, 0.0 }
 0x250   :  { %v544_v31 = vpop.eup %543  ;;  %401 = vadd.xlane.f32.xlu1 %v400_v29 }
 0x251   :  { %v397_v32 = vsel %vm356_vm12, %v544_v31, 0.0 }
 0x252   :  { %398 = vadd.xlane.f32.xlu0 %v397_v32  ;;  %v546_v10 = vpop.eup %545 }
 0x253   :  { %v406_v36 = vsel %vm356_vm12, %v546_v10, 0.0 }
 0x254   :  { %v548_v37 = vpop.eup %547  ;;  %407 = vadd.xlane.f32.xlu1 %v406_v36 }
 0x255   :  { %v403_v38 = vsel %vm356_vm12, %v548_v37, 0.0  ;;  %v550_v45 = vpop.eup %549 }
 0x256   :  { %404 = vadd.xlane.f32.xlu0 %v403_v38  ;;  %v552_v47 = vpop.eup %551 }
 0x257   :  { %v554_v9 = vpop.eup %553 }
 0x258   :  { %v556_v49 = vpop.eup %555 }
 0x2d9   :  { %v402_v8 = vpop.xlane.xlu1 %401 }
 0x2da   :  { %v410_v46 = vadd.f32 %v550_v45, %v402_v8 }
 0x2db   :  { %v399_v48 = vpop.xlane.xlu0 %398 }
 0x2dc   :  { %557 = vlog2.f32 %v410_v46  ;;  %v409_v33 = vadd.f32 %v552_v47, %v399_v48 }
 0x2dd   :  { %v408_v34 = vpop.xlane.xlu1 %407 }
 0x2de   :  { %559 = vlog2.f32 %v409_v33  ;;  %v412_v35 = vadd.f32 %v554_v9, %v408_v34 }
 0x2df   :  { %v405_v17 = vpop.xlane.xlu0 %404 }
 0x2e0   :  { %561 = vlog2.f32 %v412_v35  ;;  %v411_v20 = vadd.f32 %v556_v49, %v405_v17 }
 0x2e2   :  { %563 = vlog2.f32 %v411_v20 }
 0x2e9   :  { %v558_v21 = vpop.eup %557 }
 0x2ea   :  { %v416_v50 = vmul.f32 0.6931472, %v558_v21 }
 0x2eb   :  { %v560_v51 = vpop.eup %559 }
 0x2ec   :  { %v422_v52 = vadd.f32 %v416_v50, %v844_v3  ;;  %v414_v53 = vmul.f32 0.6931472, %v560_v51 }
 0x2ed   :  { %v562_v16 = vpop.eup %561 }
 0x2ee   :  { %v426_v54 = vsub.f32 %v422_v52, %v839_v0  ;;  %v421_v56 = vadd.f32 %v414_v53, %v848_v7  ;;  %v420_v24 = vmul.f32 0.6931472, %v562_v16 }
 0x2ef   :  { %v564_v57 = vpop.eup %563 }
 0x2f0   :  { %431 = vst.msk [vmem:[%s898_s3 + $0x8] sm:$0xff] %vm429_vm13, %v426_v54  ;;  %v425_v59 = vsub.f32 %v421_v56, %v841_v63  ;;  %v424_v25 = vadd.f32 %v420_v24, %v856_v2  ;;  %v418_v41 = vmul.f32 0.6931472, %v564_v57 }
 0x2f2   :  { %430 = vst.msk [vmem:[%s898_s3] sm:$0xff] %vm429_vm13, %v425_v59  ;;  %v428_v60 = vsub.f32 %v424_v25, %v850_v11  ;;  %v423_v42 = vadd.f32 %v418_v41, %v859_v1 }
 0x2f4   :  { %433 = vst.msk [vmem:[%s898_s3 + $0x18] sm:$0xff] %vm429_vm13, %v428_v60  ;;  %v427_v61 = vsub.f32 %v423_v42, %v852_v15 }
 0x2f6   :  { %432 = vst.msk [vmem:[%s898_s3 + $0x10] sm:$0xff] %vm429_vm13, %v427_v61 }
 0x2f7   :  { %438 = vsyncpa [#allocation3], 1 }
 0x2f8   :  { %439 = vsyncpa [#allocation5], 1 }

</bundles_post_ra>
